<compile_context>
chip_gen: v7x
topology: tpu7x:2x2x1
jax: 0.10.0
libtpu: 0.0.40
codegen_flags: <defaults>
</compile_context>

<pallas_src>
import functools

import jax
import jax.numpy as jnp
from jax.experimental import pallas as pl
from jax.experimental.pallas import tpu as pltpu


# Example sub-losses standing in for self.loss_list, expressed on the error d.
DEFAULT_DIFF_LOSSES = (
    lambda d: d * d,        # squared-error (MSE-style) loss
    lambda d: jnp.abs(d),   # absolute-error (L1-style) loss
)

_LANE_WIDTH = 512                    # lane-dense flattened width (multiple of 128)
_TARGET_TILE_BYTES = 2 * 1024 * 1024  # ~2 MiB per input tile (v5e-safe)


def _accumulated_loss_kernel(pred_ref, target_ref, out_ref, acc_ref, *,
                             diff_losses, total_elems, tile_rows, lane_width):
    """Fused multi-loss reduction over one (tile_rows, lane_width) tile.

    pred_ref / target_ref : (tile_rows, lane_width) lane-dense input tiles
    out_ref               : (1, 8, 128) per-core-chunk accumulated loss (broadcast scalar)
    acc_ref               : (K*8, lane_width) resident VMEM accumulator (8 rows per loss)
    """
    step = pl.program_id(1)

    @pl.when(step == 0)
    def _():
        acc_ref[...] = jnp.zeros_like(acc_ref)

    # Compute the error once (feeds every sub-loss).
    p = pred_ref[...].astype(jnp.float32)
    t = target_ref[...].astype(jnp.float32)
    d = p - t

    groups = tile_rows // 8
    for li, loss_fn in enumerate(diff_losses):
        vals = loss_fn(d)
        # Fold to an 8-sublane-aligned partial: (groups, 8, W) -> (8, W).
        # This is whole-vreg VPU adds; the cross-sublane/lane reduce is deferred
        # to the single finalize step below.
        part = vals.reshape(groups, 8, lane_width).sum(axis=0)
        acc_ref[li * 8:(li + 1) * 8, :] += part

    @pl.when(step == pl.num_programs(1) - 1)
    def _():
        inv_n = jnp.float32(1.0 / total_elems)
        # Per-loss mean values (the "loss_values" list), then stack(...).sum().
        total = jnp.float32(0.0)
        for li in range(len(diff_losses)):
            total = total + jnp.sum(acc_ref[li * 8:(li + 1) * 8, :]) * inv_n
        out_ref[...] = jnp.full(out_ref.shape, total, out_ref.dtype)


def accumulated_loss(pred, target, *,
                     diff_losses=DEFAULT_DIFF_LOSSES,
                     lane_width=_LANE_WIDTH,
                     target_tile_bytes=_TARGET_TILE_BYTES,
                     num_core_chunks=2):
    """JAX/Pallas equivalent of AccumulatedLoss([...]).forward(pred, target)."""
    assert pred.shape == target.shape
    total_elems = int(pred.size)
    k = len(diff_losses)
    itemsize = jnp.dtype(pred.dtype).itemsize

    # --- lane-dense flattening + bytes-targeted tiling --------------------
    flat_rows = pl.cdiv(total_elems, lane_width)
    rows_for_bytes = max(8, target_tile_bytes // (lane_width * itemsize))
    per_chunk_rows = pl.cdiv(flat_rows, num_core_chunks)
    tile_rows = min(int(rows_for_bytes), int(per_chunk_rows))
    tile_rows = -(-tile_rows // 8) * 8                       # round up to sublane multiple
    steps = pl.cdiv(per_chunk_rows, tile_rows)
    padded_rows = num_core_chunks * steps * tile_rows
    padded_elems = padded_rows * lane_width

    def _prep(x):
        xf = x.reshape(-1)
        pad = padded_elems - total_elems
        if pad:
            # Zero padding on BOTH inputs -> d = 0 -> contributes 0 to every
            # sub-loss; total_elems keeps the true element count.
            xf = jnp.pad(xf, (0, pad))
        return xf.reshape(padded_rows, lane_width)

    p2 = _prep(pred)
    t2 = _prep(target)

    kernel = functools.partial(
        _accumulated_loss_kernel,
        diff_losses=tuple(diff_losses),
        total_elems=total_elems,
        tile_rows=tile_rows,
        lane_width=lane_width)

    bytes_accessed = 2 * padded_elems * itemsize + num_core_chunks * 8 * 128 * 4
    flops = (1 + 2 * k) * padded_elems                       # diff + per-loss cost + acc

    out = pl.pallas_call(
        kernel,
        out_shape=jax.ShapeDtypeStruct((num_core_chunks, 8, 128), jnp.float32),
        grid=(num_core_chunks, steps),
        in_specs=[
            pl.BlockSpec((tile_rows, lane_width),
                         lambda c, s: (c * steps + s, 0)),
            pl.BlockSpec((tile_rows, lane_width),
                         lambda c, s: (c * steps + s, 0)),
        ],
        out_specs=pl.BlockSpec((1, 8, 128), lambda c, s: (c, 0, 0)),
        scratch_shapes=[pltpu.VMEM((k * 8, lane_width), jnp.float32)],
        compiler_params=pltpu.CompilerParams(
            dimension_semantics=("parallel", "arbitrary")),
        cost_estimate=pl.CostEstimate(
            flops=flops, transcendentals=0, bytes_accessed=bytes_accessed),
    )(p2, t2)

    # Sum the per-core-chunk partial results (each already / total_elems).
    return jnp.sum(out[:, 0, 0])


def _reference(pred, target, diff_losses=DEFAULT_DIFF_LOSSES):
    """Pure-jnp transcription of AccumulatedLoss.forward (for verification)."""
    d = pred.astype(jnp.float32) - target.astype(jnp.float32)
    loss_values = [jnp.mean(fn(d)) for fn in diff_losses]
    return jnp.sum(jnp.stack(loss_values, axis=0))


if __name__ == "__main__":
    key = jax.random.PRNGKey(0)
    jitted = jax.jit(accumulated_loss)

    # Case 1: lane-aligned batch of predicted vs. target feature vectors.
    kp, kt, key = jax.random.split(key, 3)
    pred = jax.random.normal(kp, (64, 128), dtype=jnp.float32)
    target = jax.random.normal(kt, (64, 128), dtype=jnp.float32)
    out = jax.block_until_ready(jitted(pred, target))
    ref = _reference(pred, target)
    assert out.shape == ref.shape == ()
    assert jnp.allclose(out, ref, rtol=1e-5, atol=1e-5), (out, ref)

    # Case 2: ragged shape exercising the flatten + zero-pad path.
    kp, kt = jax.random.split(key)
    pred2 = jax.random.normal(kp, (37, 96), dtype=jnp.float32)
    target2 = jax.random.normal(kt, (37, 96), dtype=jnp.float32)
    out2 = jax.block_until_ready(jax.jit(accumulated_loss)(pred2, target2))
    ref2 = _reference(pred2, target2)
    assert jnp.allclose(out2, ref2, rtol=1e-5, atol=1e-5), (out2, ref2)

    print("KERNEL_OK")
</pallas_src>

<mosaic_0001>
module attributes {stable_mosaic.version = 11 : i64} {
  func.func @_accumulated_loss_kernel(%arg0: i32, %arg1: i32, %arg2: memref<8x512xf32, #tpu.memory_space<vmem>>, %arg3: memref<8x512xf32, #tpu.memory_space<vmem>>, %arg4: memref<1x8x128xf32, #tpu.memory_space<vmem>>, %arg5: memref<16x512xf32, #tpu.memory_space<vmem>>) attributes {dimension_semantics = [#tpu.dimension_semantics<parallel>, #tpu.dimension_semantics<arbitrary>], iteration_bounds = array<i64: 2, 1>, scalar_prefetch = 0 : i64, scratch_operands = 1 : i64, tpu.core_type = #tpu.core_type<tc>, window_params = [{transform_indices = @transform_0, window_bounds = array<i64: 8, 512>}, {transform_indices = @transform_1, window_bounds = array<i64: 8, 512>}, {transform_indices = @transform_2, window_bounds = array<i64: 1, 8, 128>}]} {
    %c0_i32 = arith.constant 0 : i32
    %0 = arith.cmpi eq, %arg1, %c0_i32 : i32
    %1 = arith.extui %0 : i1 to i32
    %c0_i32_0 = arith.constant 0 : i32
    %2 = arith.cmpi ne, %1, %c0_i32_0 : i32
    scf.if %2 {
      %cst_14 = arith.constant 0.000000e+00 : f32
      %21 = vector.broadcast %cst_14 : f32 to vector<16x512xf32>
      %c0_15 = arith.constant 0 : index
      %c0_16 = arith.constant 0 : index
      %22 = vector.load %arg5[%c0_15, %c0_16] : memref<16x512xf32, #tpu.memory_space<vmem>>, vector<16x512xf32>
      tpu.vector_store %arg5[%c0_15, %c0_16], %21 {strides = array<i32>} : memref<16x512xf32, #tpu.memory_space<vmem>>, vector<16x512xf32>,
    } else {
    }
    %c0 = arith.constant 0 : index
    %c0_1 = arith.constant 0 : index
    %3 = vector.load %arg2[%c0, %c0_1] : memref<8x512xf32, #tpu.memory_space<vmem>>, vector<8x512xf32>
    %c0_2 = arith.constant 0 : index
    %c0_3 = arith.constant 0 : index
    %4 = vector.load %arg3[%c0_2, %c0_3] : memref<8x512xf32, #tpu.memory_space<vmem>>, vector<8x512xf32>
    %5 = arith.subf %3, %4 : vector<8x512xf32>
    %6 = arith.mulf %5, %5 : vector<8x512xf32>
    %7 = vector.shape_cast %6 : vector<8x512xf32> to vector<1x8x512xf32>
    %cst = arith.constant dense<0.000000e+00> : vector<8x512xf32>
    %8 = vector.multi_reduction <add>, %7, %cst [0] : vector<1x8x512xf32> to vector<8x512xf32>
    %c0_4 = arith.constant 0 : index
    %c0_5 = arith.constant 0 : index
    %9 = vector.load %arg5[%c0_4, %c0_5] : memref<16x512xf32, #tpu.memory_space<vmem>>, vector<8x512xf32>
    %10 = arith.addf %9, %8 : vector<8x512xf32>
    %c0_6 = arith.constant 0 : index
    %c0_7 = arith.constant 0 : index
    %11 = vector.load %arg5[%c0_6, %c0_7] : memref<16x512xf32, #tpu.memory_space<vmem>>, vector<8x512xf32>
    tpu.vector_store %arg5[%c0_6, %c0_7], %10 {strides = array<i32>} : memref<16x512xf32, #tpu.memory_space<vmem>>, vector<8x512xf32>,
    %12 = math.absf %5 : vector<8x512xf32>
    %13 = vector.shape_cast %12 : vector<8x512xf32> to vector<1x8x512xf32>
    %cst_8 = arith.constant dense<0.000000e+00> : vector<8x512xf32>
    %14 = vector.multi_reduction <add>, %13, %cst_8 [0] : vector<1x8x512xf32> to vector<8x512xf32>
    %c8 = arith.constant 8 : index
    %c0_9 = arith.constant 0 : index
    %15 = vector.load %arg5[%c8, %c0_9] : memref<16x512xf32, #tpu.memory_space<vmem>>, vector<8x512xf32>
    %16 = arith.addf %15, %14 : vector<8x512xf32>
    %c8_10 = arith.constant 8 : index
    %c0_11 = arith.constant 0 : index
    %17 = vector.load %arg5[%c8_10, %c0_11] : memref<16x512xf32, #tpu.memory_space<vmem>>, vector<8x512xf32>
    tpu.vector_store %arg5[%c8_10, %c0_11], %16 {strides = array<i32>} : memref<16x512xf32, #tpu.memory_space<vmem>>, vector<8x512xf32>,
    %c0_i32_12 = arith.constant 0 : i32
    %18 = arith.cmpi eq, %arg1, %c0_i32_12 : i32
    %19 = arith.extui %18 : i1 to i32
    %c0_i32_13 = arith.constant 0 : i32
    %20 = arith.cmpi ne, %19, %c0_i32_13 : i32
    scf.if %20 {
      %c0_14 = arith.constant 0 : index
      %c0_15 = arith.constant 0 : index
      %21 = vector.load %arg5[%c0_14, %c0_15] : memref<16x512xf32, #tpu.memory_space<vmem>>, vector<8x512xf32>
      %22 = vector.shape_cast %21 : vector<8x512xf32> to vector<1x8x512xf32>
      %cst_16 = arith.constant dense<0.000000e+00> : vector<1xf32>
      %23 = vector.multi_reduction <add>, %22, %cst_16 [1, 2] : vector<1x8x512xf32> to vector<1xf32>
      %24 = vector.shape_cast %23 : vector<1xf32> to vector<1x1x1xf32>
      %25 = vector.extract %24[0, 0, 0] : f32 from vector<1x1x1xf32>
      %cst_17 = arith.constant 1.22070313E-4 : f32
      %26 = arith.mulf %25, %cst_17 : f32
      %cst_18 = arith.constant 0.000000e+00 : f32
      %27 = arith.addf %cst_18, %26 : f32
      %c8_19 = arith.constant 8 : index
      %c0_20 = arith.constant 0 : index
      %28 = vector.load %arg5[%c8_19, %c0_20] : memref<16x512xf32, #tpu.memory_space<vmem>>, vector<8x512xf32>
      %29 = vector.shape_cast %28 : vector<8x512xf32> to vector<1x8x512xf32>
      %cst_21 = arith.constant dense<0.000000e+00> : vector<1xf32>
      %30 = vector.multi_reduction <add>, %29, %cst_21 [1, 2] : vector<1x8x512xf32> to vector<1xf32>
      %31 = vector.shape_cast %30 : vector<1xf32> to vector<1x1x1xf32>
      %32 = vector.extract %31[0, 0, 0] : f32 from vector<1x1x1xf32>
      %cst_22 = arith.constant 1.22070313E-4 : f32
      %33 = arith.mulf %32, %cst_22 : f32
      %34 = arith.addf %27, %33 : f32
      %35 = vector.broadcast %34 : f32 to vector<1x8x128xf32>
      %c0_23 = arith.constant 0 : index
      %c0_24 = arith.constant 0 : index
      %c0_25 = arith.constant 0 : index
      %36 = vector.load %arg4[%c0_23, %c0_24, %c0_25] : memref<1x8x128xf32, #tpu.memory_space<vmem>>, vector<1x8x128xf32>
      tpu.vector_store %arg4[%c0_23, %c0_24, %c0_25], %35 {strides = array<i32>} : memref<1x8x128xf32, #tpu.memory_space<vmem>>, vector<1x8x128xf32>,
    } else {
    }
    return
  }
  func.func @transform_0(%arg0: i32, %arg1: i32) -> (i32, i32) {
    %c1_i32 = arith.constant 1 : i32
    %0 = arith.muli %arg0, %c1_i32 : i32
    %1 = arith.addi %0, %arg1 : i32
    %c0_i32 = arith.constant 0 : i32
    %c0_i32_0 = arith.constant 0 : i32
    return %1, %c0_i32 : i32, i32
  }
  func.func @transform_1(%arg0: i32, %arg1: i32) -> (i32, i32) {
    %c1_i32 = arith.constant 1 : i32
    %0 = arith.muli %arg0, %c1_i32 : i32
    %1 = arith.addi %0, %arg1 : i32
    %c0_i32 = arith.constant 0 : i32
    %c0_i32_0 = arith.constant 0 : i32
    return %1, %c0_i32 : i32, i32
  }
  func.func @transform_2(%arg0: i32, %arg1: i32) -> (i32, i32, i32) {
    %c0_i32 = arith.constant 0 : i32
    %c0_i32_0 = arith.constant 0 : i32
    %c0_i32_1 = arith.constant 0 : i32
    return %arg0, %c0_i32, %c0_i32_0 : i32, i32, i32
  }
}

</mosaic_0001>

<bundles_post_ra>
// kernel: accumulated_loss.1
= control target key start
LH: loop header
LB: loop body
LE: loop exit
PB: predicated region body
PF: predicated region fallthrough
CT: control target
= control target key end

     0   :  { %s447_s9 = smov 0   ;;  %s449_s10 = smov 0   ;;  %s487_s0 = inlined_call_operand.vmem [shape: f32[16,512], index: 0, kind: input, shape index: {}]   ;;  %s488_s1 = inlined_call_operand.vmem [shape: f32[16,512], index: 1, kind: input, shape index: {}]   ;;  %s489_s2 = inlined_call_operand.vmem [shape: f32[2,8,128], index: 2, kind: output, shape index: {}]  }
   0x1   :  { %s451_s11 = smov 0  }
   0x2 LB: > { %s24_s12 = sadd.s32 1, %s426_s10  ;;  %p370_p0 = scmp.ge.s32.totalorder %s430_s11, 1  ;;  %s430_s11 = sphi %s451_s11, %s12_s11   ;;  %s426_s10 = sphi %s449_s10, %s491_s10   ;;  %s422_s9 = sphi %s447_s9, %s490_s9  }
   0x3   : > { %p26_p1 = scmp.ge.s32.totalorder %s24_s12, 2  ;;  %p142_p2 = scmp.lt.s32.totalorder %s430_s11, 3 }
   0x5   : > { %s493_s12 = smov (%p26_p1, %s24_s12), 0  ;;  %p143_p3 = pnand %p370_p0, %p142_p2 }
   0x6   : > { %p171_p4 = scmp.lt.s32.totalorder (!%p143_p3), %s422_s9, 1 }
   0x7   : > { %146 = sbr.rel (%p143_p3) target bundleno = 243 (0xf3), region = 28 }
   0xe   : > { %s495_s9 = smov (!%p171_p4, %s422_s9), 1 }
   0xf   : > { %s378_s13 = sshll.u32 %s495_s9, 5  ;;  %s375_s21 = sshll.u32 %s495_s9, 3 }
  0x10   : > { %s175_s16 = scalar_lea.vmem %s487_s0, %s378_s13  ;;  %s182_s19 = scalar_lea.vmem %s488_s1, %s378_s13 }
  0x11   : > { %v200_v0 = vld [vmem:[%s175_s16] sm:$0xff]  ;;  %v201_v1 = vld [vmem:[%s175_s16 + $0x8] sm:$0xff]  ;;  %v202_v2 = vld [vmem:[%s175_s16 + $0x10] sm:$0xff]  ;;  %s187_s27 = scalar_lea.vmem %s489_s2, %s375_s21 }
  0x12   : > { %v203_v3 = vld [vmem:[%s175_s16 + $0x18] sm:$0xff]  ;;  %v204_v4 = vld [vmem:[%s182_s19] sm:$0xff]  ;;  %v205_v5 = vld [vmem:[%s182_s19 + $0x8] sm:$0xff] }
  0x13   : > { %v206_v6 = vld [vmem:[%s182_s19 + $0x10] sm:$0xff]  ;;  %v207_v7 = vld [vmem:[%s182_s19 + $0x18] sm:$0xff]  ;;  %v208_v8 = vsub.f32 %v200_v0, %v204_v4  ;;  %v209_v9 = vsub.f32 %v201_v1, %v205_v5 }
  0x14   : > { %v210_v10 = vsub.f32 %v202_v2, %v206_v6  ;;  %v211_v11 = vsub.f32 %v203_v3, %v207_v7 }
  0x15   : > { %v212_v12 = vmul.f32 %v208_v8, %v208_v8  ;;  %v213_v13 = vmul.f32 %v209_v9, %v209_v9  ;;  %v232_v14 = vand.u32 2147483647, %v208_v8  ;;  %v233_v15 = vand.u32 2147483647, %v209_v9 }
  0x16   : > { %v214_v16 = vmul.f32 %v210_v10, %v210_v10  ;;  %v234_v17 = vand.u32 2147483647, %v210_v10  ;;  %v215_v18 = vmul.f32 %v211_v11, %v211_v11  ;;  %v235_v22 = vand.u32 2147483647, %v211_v11 }
  0x17   : > { %v259_v19 = vadd.f32 %v213_v13, %v212_v12  ;;  %v277_v20 = vadd.f32 %v233_v15, %v232_v14 }
  0x19   : > { %v260_v21 = vadd.f32 %v259_v19, %v214_v16  ;;  %v278_v23 = vadd.f32 %v277_v20, %v234_v17 }
  0x1b   : > { %v261_v24 = vadd.f32 %v260_v21, %v215_v18  ;;  %v279_v25 = vadd.f32 %v278_v23, %v235_v22 }
  0x1d   : > { %262 = vadd.xlane.f32.xlu0 %v261_v24 }
  0x21   : > { %280 = vadd.xlane.f32.xlu0 %v279_v25 }
  0xaa   : > { %v263_v26 = vpop.xlane.xlu0 %262 }
  0xab   : > { %v264_v27 = vrot.slane %v263_v26, 4 }
  0xad   : > { %v265_v28 = vadd.f32 %v264_v27, %v263_v26 }
  0xae   : > { %v281_v29 = vpop.xlane.xlu0 %280 }
  0xaf   : > { %v266_v30 = vrot.slane %v265_v28, 2  ;;  %v282_v31 = vrot.slane %v281_v29, 4 }
  0xb1   : > { %v283_v32 = vadd.f32 %v282_v31, %v281_v29  ;;  %v267_v33 = vadd.f32 %v266_v30, %v265_v28 }
  0xb3   : > { %v284_v34 = vrot.slane %v283_v32, 2  ;;  %v268_v35 = vrot.slane %v267_v33, 1 }
  0xb5   : > { %v285_v36 = vadd.f32 %v284_v34, %v283_v32  ;;  %v269_v37 = vadd.f32 %v268_v35, %v267_v33 }
  0xb7   : > { %380 = vpush %v269_v37  ;;  %v286_v38 = vrot.slane %v285_v36, 1 }
  0xb9   : > { %v287_v39 = vadd.f32 %v286_v38, %v285_v36 }
  0xbb   : > { %382 = vpush %v287_v39 }
  0xe8   : > { %s381_s20 = spop %380 }
  0xe9   : > { %s271_s22 = smul.f32 0.00012207031, %s381_s20 }
  0xec   : > { %s383_s23 = spop %382 }
  0xed   : > { %s289_s24 = smul.f32 0.00012207031, %s383_s23 }
  0xef   : > { %s290_s28 = sadd.f32 %s289_s24, %s271_s22 }
  0xf1   : > { %v291_v40 = vstv %s290_s28 }
  0xf2   : > { %292 = vst [vmem:[%s187_s27] sm:$0xff] %v291_v40 }
  0xf3 PF: > { %s12_s11 = sadd.s32 1, %s430_s11   ;;  %s490_s9 = smov %s426_s10 }
  0xf4   : > { %p9_p5 = scmp.ge.s32.totalorder %s12_s11, 4   ;;  %s491_s10 = smov %s493_s12 }
  0xf6   :  { %11 = sbr.rel (!%p9_p5) target bundleno = 2 (0x2), region = 69 }

</bundles_post_ra>
